<compile_context>
chip_gen: v7x
topology: tpu7x:2x2x1
jax: 0.10.0
libtpu: 0.0.40
codegen_flags: <defaults>
</compile_context>

<pallas_src>
import jax
import jax.numpy as jnp
from jax import lax
from jax.experimental import pallas as pl
from jax.experimental.pallas import tpu as pltpu

_LANES = 128
_SUBLANES = 8
_BLOCK_BYTES = 1 << 20          # per-input, per-pipeline-buffer VMEM target


def _round_up(x, m):
    return -(-x // m) * m


def _round_down(x, m):
    return (x // m) * m


def _make_dice_kernel(block_rows, steps_per_part, rows_total, needs_mask,
                      has_weights):
    """Build the streaming partial-sum kernel (static config baked in)."""

    def kernel(*refs):
        if has_weights:
            pred_ref, gt_ref, mask_ref, w_ref = refs[:4]
            inter_out, union_out = refs[4:]
        else:
            pred_ref, gt_ref, mask_ref = refs[:3]
            inter_out, union_out = refs[3:]

        step = pl.program_id(1)

        # Output blocks are resident across the reduction axis (their index
        # only depends on the parallel axis) -> they ARE the accumulators.
        @pl.when(step == 0)
        def _():
            inter_out[...] = jnp.zeros_like(inter_out)
            union_out[...] = jnp.zeros_like(union_out)

        # Cast in-register; the DMA streams the original dtype.
        p = pred_ref[...].astype(jnp.float32)
        g = gt_ref[...].astype(jnp.float32)
        m = mask_ref[...].astype(jnp.float32)
        if has_weights:
            m = m * w_ref[...].astype(jnp.float32)

        inter = p * g * m          # intersection term
        union = (p + g) * m        # pred*mask + gt*mask folded into one pass

        if needs_mask:
            # Boundary / clamped blocks: zero out rows past the logical end.
            # Masking the *products* (not just m) guards against NaN/Inf in
            # the unspecified out-of-bounds pad region of the input DMA.
            blk = pl.program_id(0) * steps_per_part + step
            row_ids = (lax.broadcasted_iota(jnp.int32, (block_rows, 1), 0)
                       + blk * block_rows)
            valid = row_ids < rows_total
            inter = jnp.where(valid, inter, 0.0)
            union = jnp.where(valid, union, 0.0)

        # (block_rows, 128) -> (block_rows/8, 8, 128); summing the leading
        # axis is pure VPU adds into the vreg-shaped output accumulator.
        inter_out[0] += inter.reshape(-1, _SUBLANES, _LANES).sum(axis=0)
        union_out[0] += union.reshape(-1, _SUBLANES, _LANES).sum(axis=0)

    return kernel


def _as_lane_matrix(x, padded_elems):
    """Flatten to (rows, 128). Free bitcast on the fast (aligned) path."""
    flat = jnp.ravel(x)
    if flat.shape[0] != padded_elems:
        # Slow path (n % 128 != 0 or n < 1024): materializes one copy.
        flat = jnp.pad(flat, (0, padded_elems - flat.shape[0]))
    return flat.reshape(-1, _LANES)


def dice_loss(pred, gt, mask, weights=None, eps=1e-6, block_rows_max=None):
    """Pallas implementation of DiceLoss.forward. Returns a scalar float32."""
    if pred.ndim == 4:
        if pred.shape[1] == 1:
            # Channel dim is 1 -> squeeze via reshape (stays a free bitcast).
            pred = pred.reshape(pred.shape[0], *pred.shape[2:])
            gt = gt.reshape(gt.shape[0], *gt.shape[2:])
        else:
            pred = pred[:, 0, :, :]
            gt = gt[:, 0, :, :]
    assert pred.shape == gt.shape
    assert pred.shape == mask.shape
    if weights is not None:
        assert weights.shape == mask.shape

    has_weights = weights is not None
    inputs = [pred, gt, mask] + ([weights] if has_weights else [])

    n = 1
    for d in pred.shape:
        n *= int(d)
    n = max(n, 1)

    # Fast path needs n % 128 == 0 (free reshape) and at least one (8,128)
    # vreg worth of rows; otherwise pad (one extra, rare/tiny HBM pass).
    padded_elems = max(_round_up(n, _LANES), _SUBLANES * _LANES)
    rows = padded_elems // _LANES

    if block_rows_max is None:
        itemsize = max(jnp.dtype(x.dtype).itemsize for x in inputs)
        block_rows_max = max(_SUBLANES, _BLOCK_BYTES // (_LANES * itemsize))
    block_rows_max = max(_round_down(int(block_rows_max), _SUBLANES), _SUBLANES)

    block_rows = min(block_rows_max, _round_down(rows, _SUBLANES))
    total_blocks = pl.cdiv(rows, block_rows)
    parts = 2 if total_blocks >= 2 else 1          # megacore split (v7x)
    steps_per_part = pl.cdiv(total_blocks, parts)
    needs_mask = (parts * steps_per_part * block_rows) != rows
    last_block = total_blocks - 1

    mats = [_as_lane_matrix(x, padded_elems) for x in inputs]

    def in_index_map(c, i):
        b = c * steps_per_part + i
        if needs_mask:
            b = jnp.minimum(b, last_block)   # keep every block start in-bounds
        return (b, 0)

    in_spec = pl.BlockSpec((block_rows, _LANES), in_index_map)
    out_spec = pl.BlockSpec((1, _SUBLANES, _LANES), lambda c, i: (c, 0, 0))

    kernel = _make_dice_kernel(block_rows, steps_per_part, rows, needs_mask,
                               has_weights)

    flops = (7 if has_weights else 6) * n
    bytes_accessed = (sum(int(m.size) * jnp.dtype(m.dtype).itemsize
                          for m in mats)
                      + 2 * parts * _SUBLANES * _LANES * 4)

    inter_parts, union_parts = pl.pallas_call(
        kernel,
        out_shape=(
            jax.ShapeDtypeStruct((parts, _SUBLANES, _LANES), jnp.float32),
            jax.ShapeDtypeStruct((parts, _SUBLANES, _LANES), jnp.float32),
        ),
        grid_spec=pltpu.PrefetchScalarGridSpec(
            num_scalar_prefetch=0,
            grid=(parts, steps_per_part),
            in_specs=[in_spec] * len(mats),
            out_specs=(out_spec, out_spec),
        ),
        compiler_params=pltpu.CompilerParams(
            dimension_semantics=("parallel", "arbitrary"),
        ),
        cost_estimate=pl.CostEstimate(
            flops=flops, transcendentals=0, bytes_accessed=bytes_accessed),
    )(*mats)

    intersection = jnp.sum(inter_parts)
    union = jnp.sum(union_parts) + jnp.float32(eps)
    # Exact divide for the final scalar (no approx reciprocal).
    return (1.0 - 2.0 * intersection / union).astype(jnp.float32)


def _reference(pred, gt, mask, weights=None, eps=1e-6):
    if pred.ndim == 4:
        pred = pred[:, 0, :, :]
        gt = gt[:, 0, :, :]
    if weights is not None:
        mask = weights * mask
    intersection = (pred * gt * mask).sum()
    union = (pred * mask).sum() + (gt * mask).sum() + eps
    return 1.0 - 2.0 * intersection / union


if __name__ == "__main__":
    key = jax.random.PRNGKey(0)
    ks = jax.random.split(key, 8)

    # Case 1: canonical (N, 1, H, W) heatmaps, no weights, aligned fast path
    # (single lane-dense block, zero-copy wrapper).
    N, H, W = 2, 32, 32
    pred = jax.random.uniform(ks[0], (N, 1, H, W), dtype=jnp.float32)
    gt = (jax.random.uniform(ks[1], (N, 1, H, W)) > 0.5).astype(jnp.float32)
    mask = (jax.random.uniform(ks[2], (N, H, W)) > 0.3).astype(jnp.float32)
    loss1 = jax.block_until_ready(dice_loss(pred, gt, mask))
    ref1 = _reference(pred, gt, mask)
    assert jnp.allclose(loss1, ref1, rtol=1e-5, atol=1e-6), (loss1, ref1)
    # Mirrors the module's host-side `assert loss <= 1`.
    assert float(loss1) <= 1.0 + 1e-6

    # Case 2: weights fused as a 4th kernel input + multi-block grid with the
    # 2-part parallel split, a partial boundary block (20 rows, block=8) and
    # a clamped fully-masked tail block. Small block_rows_max forces the
    # multi-block code path at a small shape.
    N, H, W = 2, 32, 40
    pred = jax.random.uniform(ks[3], (N, 1, H, W), dtype=jnp.float32)
    gt = (jax.random.uniform(ks[4], (N, 1, H, W)) > 0.5).astype(jnp.float32)
    mask = (jax.random.uniform(ks[5], (N, H, W)) > 0.3).astype(jnp.float32)
    weights = jax.random.uniform(ks[6], (N, H, W), dtype=jnp.float32)
    loss2 = jax.block_until_ready(
        dice_loss(pred, gt, mask, weights, block_rows_max=8))
    ref2 = _reference(pred, gt, mask, weights)
    assert jnp.allclose(loss2, ref2, rtol=1e-5, atol=1e-6), (loss2, ref2)

    # Case 3: misaligned element count (n % 128 != 0) -> slow padded path.
    N, H, W = 2, 15, 17
    pred = jax.random.uniform(ks[7], (N, 1, H, W), dtype=jnp.float32)
    gt = (jax.random.uniform(ks[0], (N, 1, H, W)) > 0.5).astype(jnp.float32)
    mask = (jax.random.uniform(ks[1], (N, H, W)) > 0.3).astype(jnp.float32)
    loss3 = jax.block_until_ready(dice_loss(pred, gt, mask))
    ref3 = _reference(pred, gt, mask)
    assert jnp.allclose(loss3, ref3, rtol=1e-5, atol=1e-6), (loss3, ref3)

    print("KERNEL_OK")
</pallas_src>

<mosaic_0001>
module attributes {stable_mosaic.version = 11 : i64} {
  func.func @kernel(%arg0: i32, %arg1: i32, %arg2: memref<16x128xf32, #tpu.memory_space<vmem>>, %arg3: memref<16x128xf32, #tpu.memory_space<vmem>>, %arg4: memref<16x128xf32, #tpu.memory_space<vmem>>, %arg5: memref<1x8x128xf32, #tpu.memory_space<vmem>>, %arg6: memref<1x8x128xf32, #tpu.memory_space<vmem>>) attributes {dimension_semantics = [#tpu.dimension_semantics<parallel>, #tpu.dimension_semantics<arbitrary>], iteration_bounds = array<i64: 1, 1>, scalar_prefetch = 0 : i64, scratch_operands = 0 : i64, tpu.core_type = #tpu.core_type<tc>, window_params = [{transform_indices = @transform_0, window_bounds = array<i64: 16, 128>}, {transform_indices = @transform_1, window_bounds = array<i64: 16, 128>}, {transform_indices = @transform_2, window_bounds = array<i64: 16, 128>}, {transform_indices = @transform_3, window_bounds = array<i64: 1, 8, 128>}, {transform_indices = @transform_4, window_bounds = array<i64: 1, 8, 128>}]} {
    %c0_i32 = arith.constant 0 : i32
    %0 = arith.cmpi eq, %arg1, %c0_i32 : i32
    %1 = arith.extui %0 : i1 to i32
    %c0_i32_0 = arith.constant 0 : i32
    %2 = arith.cmpi ne, %1, %c0_i32_0 : i32
    scf.if %2 {
      %cst_19 = arith.constant 0.000000e+00 : f32
      %26 = vector.broadcast %cst_19 : f32 to vector<1x8x128xf32>
      %c0_20 = arith.constant 0 : index
      %c0_21 = arith.constant 0 : index
      %c0_22 = arith.constant 0 : index
      %27 = vector.load %arg5[%c0_20, %c0_21, %c0_22] : memref<1x8x128xf32, #tpu.memory_space<vmem>>, vector<1x8x128xf32>
      tpu.vector_store %arg5[%c0_20, %c0_21, %c0_22], %26 {strides = array<i32>} : memref<1x8x128xf32, #tpu.memory_space<vmem>>, vector<1x8x128xf32>,
      %cst_23 = arith.constant 0.000000e+00 : f32
      %28 = vector.broadcast %cst_23 : f32 to vector<1x8x128xf32>
      %c0_24 = arith.constant 0 : index
      %c0_25 = arith.constant 0 : index
      %c0_26 = arith.constant 0 : index
      %29 = vector.load %arg6[%c0_24, %c0_25, %c0_26] : memref<1x8x128xf32, #tpu.memory_space<vmem>>, vector<1x8x128xf32>
      tpu.vector_store %arg6[%c0_24, %c0_25, %c0_26], %28 {strides = array<i32>} : memref<1x8x128xf32, #tpu.memory_space<vmem>>, vector<1x8x128xf32>,
    } else {
    }
    %c0 = arith.constant 0 : index
    %c0_1 = arith.constant 0 : index
    %3 = vector.load %arg2[%c0, %c0_1] : memref<16x128xf32, #tpu.memory_space<vmem>>, vector<16x128xf32>
    %c0_2 = arith.constant 0 : index
    %c0_3 = arith.constant 0 : index
    %4 = vector.load %arg3[%c0_2, %c0_3] : memref<16x128xf32, #tpu.memory_space<vmem>>, vector<16x128xf32>
    %c0_4 = arith.constant 0 : index
    %c0_5 = arith.constant 0 : index
    %5 = vector.load %arg4[%c0_4, %c0_5] : memref<16x128xf32, #tpu.memory_space<vmem>>, vector<16x128xf32>
    %6 = arith.mulf %3, %4 : vector<16x128xf32>
    %7 = arith.mulf %6, %5 : vector<16x128xf32>
    %8 = arith.addf %3, %4 : vector<16x128xf32>
    %9 = arith.mulf %8, %5 : vector<16x128xf32>
    %c0_6 = arith.constant 0 : index
    %c0_7 = arith.constant 0 : index
    %c0_8 = arith.constant 0 : index
    %10 = vector.load %arg5[%c0_6, %c0_7, %c0_8] : memref<1x8x128xf32, #tpu.memory_space<vmem>>, vector<1x8x128xf32>
    %11 = vector.shape_cast %10 : vector<1x8x128xf32> to vector<8x128xf32>
    %12 = vector.shape_cast %7 : vector<16x128xf32> to vector<2x8x128xf32>
    %cst = arith.constant dense<0.000000e+00> : vector<8x128xf32>
    %13 = vector.multi_reduction <add>, %12, %cst [0] : vector<2x8x128xf32> to vector<8x128xf32>
    %14 = arith.addf %11, %13 : vector<8x128xf32>
    %c0_9 = arith.constant 0 : index
    %c0_10 = arith.constant 0 : index
    %c0_11 = arith.constant 0 : index
    %15 = vector.load %arg5[%c0_9, %c0_10, %c0_11] : memref<1x8x128xf32, #tpu.memory_space<vmem>>, vector<1x8x128xf32>
    %16 = vector.shape_cast %15 : vector<1x8x128xf32> to vector<8x128xf32>
    %17 = vector.shape_cast %14 : vector<8x128xf32> to vector<1x8x128xf32>
    tpu.vector_store %arg5[%c0_9, %c0_10, %c0_11], %17 {strides = array<i32>} : memref<1x8x128xf32, #tpu.memory_space<vmem>>, vector<1x8x128xf32>,
    %c0_12 = arith.constant 0 : index
    %c0_13 = arith.constant 0 : index
    %c0_14 = arith.constant 0 : index
    %18 = vector.load %arg6[%c0_12, %c0_13, %c0_14] : memref<1x8x128xf32, #tpu.memory_space<vmem>>, vector<1x8x128xf32>
    %19 = vector.shape_cast %18 : vector<1x8x128xf32> to vector<8x128xf32>
    %20 = vector.shape_cast %9 : vector<16x128xf32> to vector<2x8x128xf32>
    %cst_15 = arith.constant dense<0.000000e+00> : vector<8x128xf32>
    %21 = vector.multi_reduction <add>, %20, %cst_15 [0] : vector<2x8x128xf32> to vector<8x128xf32>
    %22 = arith.addf %19, %21 : vector<8x128xf32>
    %c0_16 = arith.constant 0 : index
    %c0_17 = arith.constant 0 : index
    %c0_18 = arith.constant 0 : index
    %23 = vector.load %arg6[%c0_16, %c0_17, %c0_18] : memref<1x8x128xf32, #tpu.memory_space<vmem>>, vector<1x8x128xf32>
    %24 = vector.shape_cast %23 : vector<1x8x128xf32> to vector<8x128xf32>
    %25 = vector.shape_cast %22 : vector<8x128xf32> to vector<1x8x128xf32>
    tpu.vector_store %arg6[%c0_16, %c0_17, %c0_18], %25 {strides = array<i32>} : memref<1x8x128xf32, #tpu.memory_space<vmem>>, vector<1x8x128xf32>,
    return
  }
  func.func @transform_0(%arg0: i32, %arg1: i32) -> (i32, i32) {
    %c1_i32 = arith.constant 1 : i32
    %0 = arith.muli %arg0, %c1_i32 : i32
    %1 = arith.addi %0, %arg1 : i32
    %c0_i32 = arith.constant 0 : i32
    %c0_i32_0 = arith.constant 0 : i32
    return %1, %c0_i32 : i32, i32
  }
  func.func @transform_1(%arg0: i32, %arg1: i32) -> (i32, i32) {
    %c1_i32 = arith.constant 1 : i32
    %0 = arith.muli %arg0, %c1_i32 : i32
    %1 = arith.addi %0, %arg1 : i32
    %c0_i32 = arith.constant 0 : i32
    %c0_i32_0 = arith.constant 0 : i32
    return %1, %c0_i32 : i32, i32
  }
  func.func @transform_2(%arg0: i32, %arg1: i32) -> (i32, i32) {
    %c1_i32 = arith.constant 1 : i32
    %0 = arith.muli %arg0, %c1_i32 : i32
    %1 = arith.addi %0, %arg1 : i32
    %c0_i32 = arith.constant 0 : i32
    %c0_i32_0 = arith.constant 0 : i32
    return %1, %c0_i32 : i32, i32
  }
  func.func @transform_3(%arg0: i32, %arg1: i32) -> (i32, i32, i32) {
    %c0_i32 = arith.constant 0 : i32
    %c0_i32_0 = arith.constant 0 : i32
    %c0_i32_1 = arith.constant 0 : i32
    return %arg0, %c0_i32, %c0_i32_0 : i32, i32, i32
  }
  func.func @transform_4(%arg0: i32, %arg1: i32) -> (i32, i32, i32) {
    %c0_i32 = arith.constant 0 : i32
    %c0_i32_0 = arith.constant 0 : i32
    %c0_i32_1 = arith.constant 0 : i32
    return %arg0, %c0_i32, %c0_i32_0 : i32, i32, i32
  }
}

</mosaic_0001>

<bundles_post_ra>
// kernel: tpu_custom_call.1
= control target key start
LH: loop header
LB: loop body
LE: loop exit
PB: predicated region body
PF: predicated region fallthrough
CT: control target
= control target key end

     0   :  { %10 = vsyncpa [#allocation3], 0  ;;  %s369_s0 = inlined_call_operand.hbm [shape: f32[16,128], index: 0, kind: input, shape index: {}]   ;;  %s370_s1 = inlined_call_operand.hbm [shape: f32[16,128], index: 1, kind: input, shape index: {}]   ;;  %s371_s2 = inlined_call_operand.hbm [shape: f32[16,128], index: 2, kind: input, shape index: {}]   ;;  %s372_s3 = inlined_call_operand.hbm [shape: f32[1,8,128], index: 3, kind: output, shape index: {0}]   ;;  %s373_s4 = inlined_call_operand.hbm [shape: f32[1,8,128], index: 4, kind: output, shape index: {1}]  }
   0x1   :  { %11 = vsyncpa [#allocation6], 0 }
   0x2   :  { %12 = vsyncpa [#allocation4], 0 }
   0x3   :  { %13 = vsyncpa [#allocation10], 0  ;;  %s261_s15 = smov [#allocation5]   ;;  %s262_s17 = smov [#allocation2]  }
   0x4   :  { %s39_s16 = sshll.u32 %s261_s15, 4  ;;  %s23_s18 = sshll.u32 %s262_s17, 4  ;;  %s40_s16 = int_to_ptr.vmem [resolvable:$true] %s39_s16  ;;  %s293_s18 = int_to_ptr.vmem [resolvable:$true] %s23_s18 }
   0x5   :  { %s143_s21 = scalar_lea.hbm %s370_s1, 256 }
   0x6   :  { %p144_p0 = scmp.ne.s32.totalorder %s370_s1, %s143_s21  ;;  %p147_p1 = scmp.lt.u32.totalorder %s143_s21, %s370_s1 }
   0x8   :  { %p149_p2 = pnand %p147_p1, %p144_p0 }
   0xa   :  { %152 = shalt.err (!%p149_p2)
}
   0xb   :  { %s153_s26 = scalar_lea.vmem %s40_s16, 256  ;;  %p158_p4 = scmp.lt.s32.totalorder %s40_s16, %s40_s16 }
   0xc   :  { %p154_p3 = scmp.ne.s32.totalorder %s40_s16, %s153_s26  ;;  %p159_p5 = scmp.lt.s32.totalorder %s153_s26, %s153_s26 }
   0xe   :  { %p160_p6 = por %p159_p5, %p158_p4 }
  0x10   :  { %p161_p7 = pnand %p160_p6, %p154_p3 }
  0x12   :  { %164 = shalt.err (!%p161_p7)
}
  0x13   :  { %s263_s27 = smov 128   ;;  %s264_s28 = smov 8  }
  0x14   :  { %45 = dma.hbm_to_vmem [thread:$0]  %s370_s1, 256, %s40_s16, [#allocation6], %s263_s27, %s263_s27, %s264_s28  }
  0x15   :  { %s165_s7 = scalar_lea.hbm %s369_s0, 256 }
  0x16   :  { %p166_p8 = scmp.ne.s32.totalorder %s369_s0, %s165_s7  ;;  %p169_p9 = scmp.lt.u32.totalorder %s165_s7, %s369_s0 }
  0x18   :  { %p171_p10 = pnand %p169_p9, %p166_p8 }
  0x1a   :  { %174 = shalt.err (!%p171_p10)
}
  0x1b   :  { %s175_s12 = scalar_lea.vmem %s293_s18, 256  ;;  %p180_p12 = scmp.lt.s32.totalorder %s293_s18, %s293_s18 }
  0x1c   :  { %p176_p11 = scmp.ne.s32.totalorder %s293_s18, %s175_s12  ;;  %p181_p13 = scmp.lt.s32.totalorder %s175_s12, %s175_s12 }
  0x1e   :  { %p182_p0 = por %p181_p13, %p180_p12 }
  0x20   :  { %p183_p1 = pnand %p182_p0, %p176_p11 }
  0x22   :  { %186 = shalt.err (!%p183_p1)
}
  0x23   :  { %29 = dma.hbm_to_vmem [thread:$0]  %s369_s0, 256, %s293_s18, [#allocation3], %s263_s27, %s263_s27, %s264_s28  }
  0x24   :  { %s265_s14 = smov [#allocation7]   ;;  %s187_s19 = scalar_lea.hbm %s371_s2, 256 }
  0x25   :  { %s55_s15 = sshll.u32 %s265_s14, 4  ;;  %p188_p2 = scmp.ne.s32.totalorder %s371_s2, %s187_s19  ;;  %s56_s15 = int_to_ptr.vmem [resolvable:$true] %s55_s15 }
  0x26   :  { %p191_p3 = scmp.lt.u32.totalorder %s187_s19, %s371_s2 }
  0x28   :  { %p193_p4 = pnand %p191_p3, %p188_p2 }
  0x2a   :  { %196 = shalt.err (!%p193_p4)
}
  0x2b   :  { %s197_s24 = scalar_lea.vmem %s56_s15, 256  ;;  %p202_p6 = scmp.lt.s32.totalorder %s56_s15, %s56_s15 }
  0x2c   :  { %p198_p5 = scmp.ne.s32.totalorder %s56_s15, %s197_s24  ;;  %p203_p7 = scmp.lt.s32.totalorder %s197_s24, %s197_s24 }
  0x2e   :  { %p204_p8 = por %p203_p7, %p202_p6 }
  0x30   :  { %p205_p9 = pnand %p204_p8, %p198_p5 }
  0x32   :  { %208 = shalt.err (!%p205_p9)
}
  0x33   :  { %61 = dma.hbm_to_vmem [thread:$0]  %s371_s2, 256, %s56_s15, [#allocation6], %s263_s27, %s263_s27, %s264_s28  }
  0x34   :  { %253 = dma.done.wait [#allocation3], 256  }
  0x35   :  { %254 = vsyncadd [#allocation3], 4294967040 }
  0x36   :  { %255 = dma.done.wait [#allocation6], 512  }
  0x37   :  { %256 = vsyncadd [#allocation6], 4294966784  ;;  %v83_v0 = vld [vmem:[#allocation2] sm:$0xff]  ;;  %v84_v1 = vld [vmem:[#allocation2 + $0x8] sm:$0xff]  ;;  %s266_s25 = smov [#allocation8]   ;;  %s267_s26 = smov [#allocation9]  }
  0x38   :  { %v85_v2 = vld [vmem:[#allocation5] sm:$0xff]  ;;  %v86_v3 = vld [vmem:[#allocation5 + $0x8] sm:$0xff]  ;;  %v87_v4 = vld [vmem:[#allocation7] sm:$0xff]  ;;  %s111_s2 = sshll.u32 %s266_s25, 4  ;;  %s121_s27 = sshll.u32 %s267_s26, 4  ;;  %s112_s2 = int_to_ptr.vmem [resolvable:$true] %s111_s2  ;;  %s122_s27 = int_to_ptr.vmem [resolvable:$true] %s121_s27 }
  0x39   :  { %v88_v5 = vld [vmem:[#allocation7 + $0x8] sm:$0xff]  ;;  %v89_v6 = vmul.f32 %v85_v2, %v83_v0  ;;  %v93_v7 = vadd.f32 %v85_v2, %v83_v0  ;;  %v90_v8 = vmul.f32 %v86_v3, %v84_v1  ;;  %v94_v9 = vadd.f32 %v86_v3, %v84_v1  ;;  %s209_s28 = scalar_lea.vmem %s112_s2, 128  ;;  %p214_p11 = scmp.lt.s32.totalorder %s112_s2, %s112_s2 }
  0x3a   :  { %p210_p10 = scmp.ne.s32.totalorder %s112_s2, %s209_s28  ;;  %p215_p12 = scmp.lt.s32.totalorder %s209_s28, %s209_s28 }
  0x3b   :  { %v91_v10 = vmul.f32 %v89_v6, %v87_v4  ;;  %v95_v11 = vmul.f32 %v93_v7, %v87_v4  ;;  %v92_v12 = vmul.f32 %v90_v8, %v88_v5  ;;  %v96_v13 = vmul.f32 %v94_v9, %v88_v5 }
  0x3c   :  { %p216_p13 = por %p215_p12, %p214_p11 }
  0x3d   :  { %v98_v14 = vadd.f32 %v92_v12, %v91_v10  ;;  %v102_v15 = vadd.f32 %v96_v13, %v95_v11 }
  0x3e   :  { %p217_p0 = pnand %p216_p13, %p210_p10 }
  0x3f   :  { %100 = vst [vmem:[#allocation8] sm:$0xff] %v98_v14  ;;  %104 = vst [vmem:[#allocation9] sm:$0xff] %v102_v15 }
  0x40   :  { %220 = shalt.err (!%p217_p0)
}
  0x41   :  { %s221_s5 = scalar_lea.hbm %s372_s3, 128 }
  0x42   :  { %p222_p1 = scmp.ne.s32.totalorder %s372_s3, %s221_s5  ;;  %p225_p2 = scmp.lt.u32.totalorder %s221_s5, %s372_s3 }
  0x44   :  { %p227_p3 = pnand %p225_p2, %p222_p1 }
  0x46   :  { %230 = shalt.err (!%p227_p3)
}
  0x47   :  { %114 = dma.vmem_to_hbm [thread:$0]  %s112_s2, 128, %s372_s3, [#allocation4]  }
  0x48   :  { %s231_s12 = scalar_lea.vmem %s122_s27, 128  ;;  %p236_p5 = scmp.lt.s32.totalorder %s122_s27, %s122_s27 }
  0x49   :  { %p232_p4 = scmp.ne.s32.totalorder %s122_s27, %s231_s12  ;;  %p237_p6 = scmp.lt.s32.totalorder %s231_s12, %s231_s12 }
  0x4b   :  { %p238_p7 = por %p237_p6, %p236_p5 }
  0x4d   :  { %p239_p8 = pnand %p238_p7, %p232_p4 }
  0x4f   :  { %242 = shalt.err (!%p239_p8)
}
  0x50   :  { %s243_s14 = scalar_lea.hbm %s373_s4, 128 }
  0x51   :  { %p244_p9 = scmp.ne.s32.totalorder %s373_s4, %s243_s14  ;;  %p247_p10 = scmp.lt.u32.totalorder %s243_s14, %s373_s4 }
  0x53   :  { %p249_p11 = pnand %p247_p10, %p244_p9 }
  0x55   :  { %252 = shalt.err (!%p249_p11)
}
  0x56   :  { %124 = dma.vmem_to_hbm [thread:$0]  %s122_s27, 128, %s373_s4, [#allocation10]  }
  0x57   :  { %257 = dma.done.wait [#allocation4], 128  }
  0x58   :  { %258 = vsyncadd [#allocation4], 4294967168 }
  0x59   :  { %259 = dma.done.wait [#allocation10], 128  }
  0x5a   :  { %260 = vsyncadd [#allocation10], 4294967168 }
  0x5b   :  { %131 = vsyncpa [#allocation3], 1 }
  0x5c   :  { %132 = vsyncpa [#allocation6], 1 }
  0x5d   :  { %133 = vsyncpa [#allocation4], 1 }
  0x5e   :  { %134 = vsyncpa [#allocation10], 1 }

</bundles_post_ra>
